<compile_context>
chip_gen: v7x
topology: tpu7x:2x2x1
jax: 0.10.0
libtpu: 0.0.40
codegen_flags: <defaults>
</compile_context>

<pallas_src>
import jax
import jax.numpy as jnp
from jax import lax
from jax.experimental import pallas as pl
from jax.experimental.pallas import tpu as pltpu


def _time_feature_embed_kernel(x_ref, w_ref, b_ref, o_ref):
    # x_ref: (TM, d_inp)        one M-tile of flattened time features
    # w_ref: (d_model, d_inp)   PyTorch nn.Linear weight layout (VMEM resident)
    # b_ref: (1, d_model)       bias (VMEM resident)
    # o_ref: (TM, d_model)      float32 output tile
    y = lax.dot_general(
        x_ref[...], w_ref[...],
        dimension_numbers=(((1,), (1,)), ((), ())),   # x @ W.T
        preferred_element_type=jnp.float32,
    )
    o_ref[...] = y + b_ref[...]


def _choose_tm(m: int, d_inp: int, d_model: int) -> int:
    """Largest M-tile whose double-buffered x+out footprint fits a VMEM budget."""
    pad_lane = lambda n: -(-n // 128) * 128           # lane (last-dim) padding
    row_bytes = 4 * (pad_lane(d_inp) + pad_lane(d_model))
    budget = 12 << 20                                  # ~12 MiB for the 2x double buffers
    tm = (budget // (2 * row_bytes) // 256) * 256
    tm = max(256, min(2048, tm))                       # multiple of 8 by construction
    if m <= tm:
        return m                                       # block == full dim is always legal
    return tm


@jax.jit
def time_feature_embedding(x, weight, bias):
    """x: (B, L, d_inp); weight: (d_model, d_inp) [PyTorch layout]; bias: (d_model,).

    Returns (B, L, d_model) float32, matching `self.embed(x).float()`.
    """
    B, L, d_inp = x.shape
    d_model = weight.shape[0]
    M = B * L
    TM = _choose_tm(M, d_inp, d_model)
    grid_m = pl.cdiv(M, TM)

    x2d = x.reshape(M, d_inp).astype(jnp.float32)
    w = weight.astype(jnp.float32)
    b2d = bias.reshape(1, d_model).astype(jnp.float32)

    cost = pl.CostEstimate(
        flops=2 * M * d_inp * d_model,
        transcendentals=0,
        bytes_accessed=4 * (M * d_inp + d_inp * d_model + d_model + M * d_model),
    )

    out = pl.pallas_call(
        _time_feature_embed_kernel,
        out_shape=jax.ShapeDtypeStruct((M, d_model), jnp.float32),
        grid_spec=pltpu.PrefetchScalarGridSpec(
            num_scalar_prefetch=0,
            grid=(grid_m,),
            in_specs=[
                pl.BlockSpec((TM, d_inp), lambda i: (i, 0)),        # x tile walks M
                pl.BlockSpec((d_model, d_inp), lambda i: (0, 0)),   # weight resident
                pl.BlockSpec((1, d_model), lambda i: (0, 0)),       # bias resident
            ],
            out_specs=pl.BlockSpec((TM, d_model), lambda i: (i, 0)),
        ),
        compiler_params=pltpu.CompilerParams(
            dimension_semantics=("parallel",),
            vmem_limit_bytes=32 << 20,
        ),
        cost_estimate=cost,
    )(x2d, w, b2d)

    return out.reshape(B, L, d_model)


if __name__ == "__main__":
    # freq='t' -> d_inp = 5 (Informer freq_map); small d_model for the test.
    B, L, d_inp, d_model = 2, 8, 5, 32

    key = jax.random.PRNGKey(0)
    kx, kw, kb = jax.random.split(key, 3)

    # Deterministic parameter init mimicking nn.Linear: U(-1/sqrt(d_inp), 1/sqrt(d_inp))
    bound = 1.0 / jnp.sqrt(jnp.float32(d_inp))
    weight = jax.random.uniform(kw, (d_model, d_inp), jnp.float32, -bound, bound)
    bias = jax.random.uniform(kb, (d_model,), jnp.float32, -bound, bound)

    x = jax.random.normal(kx, (B, L, d_inp), jnp.float32)

    y = time_feature_embedding(x, weight, bias)
    y = jax.block_until_ready(y)

    # Reference check in plain JAX (same math as torch nn.Linear).
    y_ref = (x.reshape(-1, d_inp) @ weight.T + bias).reshape(B, L, d_model)
    assert y.shape == (B, L, d_model)
    assert y.dtype == jnp.float32
    assert jnp.allclose(y, y_ref, atol=1e-5, rtol=1e-5)

    print("KERNEL_OK")
</pallas_src>

<mosaic_0001>
module attributes {stable_mosaic.version = 11 : i64} {
  func.func @_time_feature_embed_kernel(%arg0: i32, %arg1: memref<16x5xf32, #tpu.memory_space<vmem>>, %arg2: memref<32x5xf32, #tpu.memory_space<vmem>>, %arg3: memref<1x32xf32, #tpu.memory_space<vmem>>, %arg4: memref<16x32xf32, #tpu.memory_space<vmem>>) attributes {dimension_semantics = [#tpu.dimension_semantics<parallel>], iteration_bounds = array<i64: 1>, scalar_prefetch = 0 : i64, scratch_operands = 0 : i64, tpu.core_type = #tpu.core_type<tc>, window_params = [{transform_indices = @transform_0, window_bounds = array<i64: 16, 5>}, {pipeline_mode = #tpu.pipeline_mode<synchronous>, transform_indices = @transform_1, window_bounds = array<i64: 32, 5>}, {pipeline_mode = #tpu.pipeline_mode<synchronous>, transform_indices = @transform_2, window_bounds = array<i64: 1, 32>}, {transform_indices = @transform_3, window_bounds = array<i64: 16, 32>}]} {
    %c0 = arith.constant 0 : index
    %c0_0 = arith.constant 0 : index
    %0 = vector.load %arg1[%c0, %c0_0] : memref<16x5xf32, #tpu.memory_space<vmem>>, vector<16x5xf32>
    %c0_1 = arith.constant 0 : index
    %c0_2 = arith.constant 0 : index
    %1 = vector.load %arg2[%c0_1, %c0_2] : memref<32x5xf32, #tpu.memory_space<vmem>>, vector<32x5xf32>
    %cst = arith.constant dense<0.000000e+00> : vector<16x32xf32>
    %2 = tpu.matmul %0, %1, %cst {dimension_numbers = #tpu.dot_dimension_numbers<[1], [1], [0], [0], [0, 0, 1, 0], [], []>} : vector<16x5xf32>, vector<32x5xf32>, vector<16x32xf32> -> vector<16x32xf32>
    %c0_3 = arith.constant 0 : index
    %c0_4 = arith.constant 0 : index
    %3 = vector.load %arg3[%c0_3, %c0_4] : memref<1x32xf32, #tpu.memory_space<vmem>>, vector<1x32xf32>
    %4 = vector.broadcast %3 : vector<1x32xf32> to vector<16x32xf32>
    %5 = arith.addf %2, %4 : vector<16x32xf32>
    %c0_5 = arith.constant 0 : index
    %c0_6 = arith.constant 0 : index
    %6 = vector.load %arg4[%c0_5, %c0_6] : memref<16x32xf32, #tpu.memory_space<vmem>>, vector<16x32xf32>
    tpu.vector_store %arg4[%c0_5, %c0_6], %5 {strides = array<i32>} : memref<16x32xf32, #tpu.memory_space<vmem>>, vector<16x32xf32>,
    return
  }
  func.func @transform_0(%arg0: i32) -> (i32, i32) {
    %c0_i32 = arith.constant 0 : i32
    %c0_i32_0 = arith.constant 0 : i32
    return %arg0, %c0_i32 : i32, i32
  }
  func.func @transform_1(%arg0: i32) -> (i32, i32) {
    %c0_i32 = arith.constant 0 : i32
    %c0_i32_0 = arith.constant 0 : i32
    %c0_i32_1 = arith.constant 0 : i32
    return %c0_i32, %c0_i32_0 : i32, i32
  }
  func.func @transform_2(%arg0: i32) -> (i32, i32) {
    %c0_i32 = arith.constant 0 : i32
    %c0_i32_0 = arith.constant 0 : i32
    %c0_i32_1 = arith.constant 0 : i32
    return %c0_i32, %c0_i32_0 : i32, i32
  }
  func.func @transform_3(%arg0: i32) -> (i32, i32) {
    %c0_i32 = arith.constant 0 : i32
    %c0_i32_0 = arith.constant 0 : i32
    return %arg0, %c0_i32 : i32, i32
  }
}

</mosaic_0001>

<bundles_post_ra>
// kernel: time_feature_embedding.1
= control target key start
LH: loop header
LB: loop body
LE: loop exit
PB: predicated region body
PF: predicated region fallthrough
CT: control target
= control target key end

     0   :  { %vm28_vm0 = vcmask 39936   ;;  %s260_s0 = inlined_call_operand.vmem [shape: f32[16,5], index: 0, kind: input, shape index: {}]   ;;  %s261_s1 = inlined_call_operand.vmem [shape: f32[32,5], index: 1, kind: input, shape index: {}]   ;;  %s262_s2 = inlined_call_operand.vmem [shape: f32[1,32], index: 2, kind: input, shape index: {}]   ;;  %s263_s3 = inlined_call_operand.hbm [shape: f32[16,32], index: 3, kind: output, shape index: {}]  }
   0x1   :  { %v17_v0 = vld [vmem:[%s261_s1] sm:$0xff]  ;;  %v18_v1 = vld [vmem:[%s261_s1 + $0x8] sm:$0xff]  ;;  %v19_v2 = vld [vmem:[%s261_s1 + $0x10] sm:$0xff] }
   0x2   :  { %v165_v3 = vpack.c.bf16 %v18_v1, %v17_v0  ;;  %vm166_vm1 = vmpackc.low %vm28_vm0, %vm28_vm0  ;;  %v20_v4 = vld [vmem:[%s261_s1 + $0x18] sm:$0xff]  ;;  %v15_v5 = vld [vmem:[%s260_s0] sm:$0xff] }
   0x3   :  { %v171_v6 = vpack.c.bf16 %v20_v4, %v19_v2  ;;  %162 = vmatprep.mubr.msk.f32.mxu0 %vm28_vm0, %v15_v5 }
   0x4   :  { %8 = vsyncpa [#allocation3], 0  ;;  %167 = vmatprep.subr.msk.bf16.mxu0 %vm166_vm1, %v165_v3  ;;  %v16_v7 = vld [vmem:[%s260_s0 + $0x8] sm:$0xff]  ;;  %v141_v8 = vld [vmem:[%s262_s2] ss:$0 sm:$0xff]  ;;  %s204_s1 = smov [#allocation2]  }
   0x5   :  { %170 = vmatpush3.bf16.xpose.msk.msra.mxu0 %vm166_vm1, %v165_v3  ;;  %s130_s26 = sshll.u32 %s204_s1, 4  ;;  %vm122_vm2 = vcmask 261120   ;;  %s131_s26 = int_to_ptr.vmem [resolvable:$true] %s130_s26 }
   0x6   :  { %173 = vmatprep.subr.msk.bf16.mxu0 %vm166_vm1, %v171_v6  ;;  %s180_s27 = scalar_lea.vmem %s131_s26, 256  ;;  %p185_p1 = scmp.lt.s32.totalorder %s131_s26, %s131_s26 }
   0x7   :  { %p181_p0 = scmp.ne.s32.totalorder %s131_s26, %s180_s27  ;;  %p186_p2 = scmp.lt.s32.totalorder %s180_s27, %s180_s27 }
   0x9   :  { %p187_p3 = por %p186_p2, %p185_p1 }
   0xb   :  { %p188_p4 = pnand %p187_p3, %p181_p0 }
   0xd   :  { %176 = vmatpush3.bf16.xpose.msk.msra.mxu0 %vm166_vm1, %v171_v6 }
  0x14   :  { %163 = vmatmul.mubr.msk.f32.vlgmr.msra.gmra.mrb[0].mxu0 %vm28_vm0, %v16_v7 }
  0xe7   :  { %v164_v9 = vpop.f32.mrb[0].mxu0 }
  0xe8   :  { %v119_v10 = vadd.f32 %v164_v9, %v141_v8  ;;  %v113_v11 = vpop.f32.mrb[1].mxu0 }
  0xe9   :  { %v114_v12 = vadd.f32 %v141_v8, %v113_v11 }
  0xea   :  { %124 = vst.msk [vmem:[#allocation2 + $0x8] sm:$0xff] %vm122_vm2, %v119_v10 }
  0xeb   :  { %123 = vst.msk [vmem:[#allocation2] sm:$0xff] %vm122_vm2, %v114_v12 }
  0xec   :  { %191 = shalt.err (!%p188_p4)
}
  0xed   :  { %s192_s2 = scalar_lea.hbm %s263_s3, 256 }
  0xee   :  { %p193_p5 = scmp.ne.s32.totalorder %s263_s3, %s192_s2  ;;  %p196_p6 = scmp.lt.u32.totalorder %s192_s2, %s263_s3 }
  0xf0   :  { %p198_p7 = pnand %p196_p6, %p193_p5 }
  0xf2   :  { %201 = shalt.err (!%p198_p7)
}
  0xf3   :  { %s205_s6 = smov 128   ;;  %s206_s7 = smov 8  }
  0xf4   :  { %136 = dma.vmem_to_hbm [thread:$0]  %s131_s26, 256, %s263_s3, [#allocation3], %s205_s6, %s205_s6, %s206_s7  }
  0xf5   :  { %202 = dma.done.wait [#allocation3], 256  }
  0xf6   :  { %203 = vsyncadd [#allocation3], 4294967040 }
  0xf7   :  { %140 = vsyncpa [#allocation3], 1 }

</bundles_post_ra>
